<compile_context>
chip_gen: v7x
topology: tpu7x:2x2x1
jax: 0.10.0
libtpu: 0.0.40
codegen_flags: <defaults>
</compile_context>

<pallas_src>
import jax
import jax.numpy as jnp
from jax.experimental import pallas as pl
from jax.experimental.pallas import tpu as pltpu


def _round_up(n, m):
    return (n + m - 1) // m * m


def _num_tensorcores():
    """Best-effort TensorCore count of the default device (2 on v7x, else 1)."""
    try:
        return max(1, int(getattr(jax.devices()[0], "num_cores", 1) or 1))
    except Exception:
        return 1


def _mlp_kernel(x_ref, w1_ref, b1_ref, w2_ref, b2_ref, w3_ref, b3_ref,
                w4_ref, b4_ref, o_ref):
    """Whole 4-layer forward for one batch tile; all matmuls hit the MXU."""
    wdt = w1_ref.dtype  # compute dtype of the weights (f32 or bf16)

    h = x_ref[...]
    if h.dtype != wdt:           # x is normally pre-cast in the wrapper
        h = h.astype(wdt)

    for w_ref, b_ref in ((w1_ref, b1_ref), (w2_ref, b2_ref), (w3_ref, b3_ref)):
        h = jnp.dot(h, w_ref[...], preferred_element_type=jnp.float32) + b_ref[...]
        if h.dtype != wdt:
            # bf16 path: cast before ReLU (numerically identical to relu-then-cast,
            # halves live bytes / VMEM spill traffic; VALU is bf16-native on v6e/v7x).
            h = h.astype(wdt)
        h = jnp.maximum(h, 0.0)  # already in the dtype the next matmul's LHS needs

    h = jnp.dot(h, w4_ref[...], preferred_element_type=jnp.float32) + b4_ref[...]
    o_ref[...] = h.astype(o_ref.dtype)


def prepare_params(params, *, weights_dtype=None):
    """One-time parameter prep, hoisted out of the per-call forward.

      * Layer-3 width padded 64 -> 128 (pad W3 columns, b3, W4 rows).  Exact:
        padded entries are zero, so they contribute nothing.
      * Optional weight cast (e.g. jnp.bfloat16 for the bf16-native MXU);
        biases stay f32 since they add into the f32 MXU accumulator.
    """
    w3, b3, w4 = params["w3"], params["b3"], params["w4"]
    h3 = w3.shape[1]
    h3_pad = _round_up(h3, 128)
    if h3_pad != h3:
        w3 = jnp.pad(w3, ((0, 0), (0, h3_pad - h3)))
        b3 = jnp.pad(b3, ((0, 0), (0, h3_pad - h3)))
        w4 = jnp.pad(w4, ((0, h3_pad - h3), (0, 0)))

    weights = [params["w1"], params["w2"], w3, w4]
    biases = [params["b1"], params["b2"], b3, params["b4"]]
    if weights_dtype is not None:
        weights = [w.astype(weights_dtype) for w in weights]
    return {"weights": tuple(weights), "biases": tuple(biases)}


def trading_q_network(x, prepped, *, batch_tile=512):
    """Forward pass of TradingQNetwork.

    x: [B, input_dim] float32 (or bf16).
    prepped: output of prepare_params().
    batch_tile: rows per grid step for large batches (multiple of 8).  512 is a
      good default on all generations (cap near 512 on v5e; 512-1024 on v6e/v7x).
      Batches <= batch_tile (on 1-TC chips) run in a single invocation.
    """
    weights, biases = prepped["weights"], prepped["biases"]
    B, input_dim = x.shape
    output_dim = weights[3].shape[1]
    wdt = weights[0].dtype

    # Stream x in the weight dtype: halves input HBM traffic when weights are bf16
    # (accumulation stays f32 inside the kernel).
    if x.dtype != wdt:
        x = x.astype(wdt)

    # --- Batch tiling ---------------------------------------------------------
    # On multi-TC chips (v7x) make sure the "parallel" batch axis has >= 1 grid
    # step per core; otherwise a single big tile (or one invocation) is best.
    ncores = _num_tensorcores()
    if ncores > 1 and B > 128:
        tile = min(batch_tile, _round_up(pl.cdiv(B, ncores), 8))
    elif B <= batch_tile:
        tile = B
    else:
        tile = batch_tile
    b_pad = _round_up(B, tile)
    x_in = x if b_pad == B else jnp.pad(x, ((0, b_pad - B), (0, 0)))

    grid = (b_pad // tile,)

    # Weights/biases (~250 KB f32 after padding) stay VMEM-resident via constant
    # index_maps; no re-DMA across batch tiles.
    resident = lambda r, c: pl.BlockSpec((r, c), lambda i: (0, 0))
    in_specs = [pl.BlockSpec((tile, input_dim), lambda i: (i, 0))]  # x
    for w, b in zip(weights, biases):
        in_specs.append(resident(*w.shape))
        in_specs.append(resident(*b.shape))

    d1, d2, d3 = weights[0].shape[1], weights[1].shape[1], weights[2].shape[1]
    flops = 2 * b_pad * (input_dim * d1 + d1 * d2 + d2 * d3 + d3 * output_dim)
    bytes_accessed = (
        x_in.size * x_in.dtype.itemsize
        + sum(w.size * w.dtype.itemsize for w in weights)
        + sum(b.size * b.dtype.itemsize for b in biases)
        + b_pad * output_dim * jnp.dtype(jnp.float32).itemsize
    )

    out = pl.pallas_call(
        _mlp_kernel,
        # Unpadded lane width: output_dim columns only.  Q-values emitted in f32
        # regardless of weight dtype (argmax stability); output traffic is tiny.
        out_shape=jax.ShapeDtypeStruct((b_pad, output_dim), jnp.float32),
        grid_spec=pltpu.PrefetchScalarGridSpec(
            num_scalar_prefetch=0,
            grid=grid,
            in_specs=in_specs,
            out_specs=pl.BlockSpec((tile, output_dim), lambda i: (i, 0)),
        ),
        compiler_params=pltpu.CompilerParams(
            dimension_semantics=("parallel",),
            vmem_limit_bytes=32 << 20,   # explicit; far above actual footprint
        ),
        cost_estimate=pl.CostEstimate(
            flops=flops, transcendentals=0, bytes_accessed=bytes_accessed),
    )(x_in, weights[0], biases[0], weights[1], biases[1],
      weights[2], biases[2], weights[3], biases[3])

    return out[:B] if b_pad != B else out


def init_params(key, input_dim, output_dim):
    """Deterministic init mirroring nn.Linear default (uniform +-1/sqrt(fan_in))."""
    dims = [(input_dim, 256), (256, 128), (128, 64), (64, output_dim)]
    params = {}
    for idx, (fan_in, fan_out) in enumerate(dims, start=1):
        key, kw, kb = jax.random.split(key, 3)
        bound = 1.0 / jnp.sqrt(jnp.float32(fan_in))
        params[f"w{idx}"] = jax.random.uniform(
            kw, (fan_in, fan_out), jnp.float32, -bound, bound)
        # Biases kept 2D (1, fan_out) for clean lane-aligned broadcasting in-kernel.
        params[f"b{idx}"] = jax.random.uniform(
            kb, (1, fan_out), jnp.float32, -bound, bound)
    return params


def reference_forward(x, params):
    h = x
    for idx in range(1, 4):
        h = jnp.maximum(h @ params[f"w{idx}"] + params[f"b{idx}"], 0.0)
    return h @ params["w4"] + params["b4"]


if __name__ == "__main__":
    key = jax.random.PRNGKey(0)
    batch, input_dim, output_dim = 8, 32, 4

    kx, kp = jax.random.split(key)
    x = jax.random.normal(kx, (batch, input_dim), jnp.float32)
    params = init_params(kp, input_dim, output_dim)

    # Small batch, f32 weights: latency path (single invocation, prepped params
    # reused across calls).  Tight check vs reference; layer-3 padding is exact.
    prepped_f32 = prepare_params(params)
    out = jax.block_until_ready(trading_q_network(x, prepped_f32))
    ref = reference_forward(x, params)
    assert out.shape == (batch, output_dim)
    assert jnp.allclose(out, ref, atol=1e-4, rtol=1e-4), "f32 mismatch vs reference"

    # Larger batch exercising the tiled grid (splits across TCs on v7x) with bf16
    # weights + bf16 x/activation streaming, f32 accumulation and f32 Q-values.
    prepped_bf16 = prepare_params(params, weights_dtype=jnp.bfloat16)
    big_b = 512
    xb = jax.random.normal(jax.random.PRNGKey(1), (big_b, input_dim), jnp.float32)
    out_bf16 = jax.block_until_ready(
        trading_q_network(xb, prepped_bf16, batch_tile=512))
    ref_big = reference_forward(xb, params)
    assert out_bf16.shape == (big_b, output_dim)
    assert jnp.allclose(out_bf16, ref_big, atol=5e-2, rtol=5e-2), "bf16 mismatch"

    print("KERNEL_OK")
</pallas_src>

<mosaic_0001>
module attributes {stable_mosaic.version = 11 : i64} {
  func.func @_mlp_kernel(%arg0: i32, %arg1: memref<8x32xf32, #tpu.memory_space<vmem>>, %arg2: memref<32x256xf32, #tpu.memory_space<vmem>>, %arg3: memref<1x256xf32, #tpu.memory_space<vmem>>, %arg4: memref<256x128xf32, #tpu.memory_space<vmem>>, %arg5: memref<1x128xf32, #tpu.memory_space<vmem>>, %arg6: memref<128x128xf32, #tpu.memory_space<vmem>>, %arg7: memref<1x128xf32, #tpu.memory_space<vmem>>, %arg8: memref<128x4xf32, #tpu.memory_space<vmem>>, %arg9: memref<1x4xf32, #tpu.memory_space<vmem>>, %arg10: memref<8x4xf32, #tpu.memory_space<vmem>>) attributes {dimension_semantics = [#tpu.dimension_semantics<parallel>], iteration_bounds = array<i64: 1>, scalar_prefetch = 0 : i64, scratch_operands = 0 : i64, tpu.core_type = #tpu.core_type<tc>, window_params = [{transform_indices = @transform_0, window_bounds = array<i64: 8, 32>}, {pipeline_mode = #tpu.pipeline_mode<synchronous>, transform_indices = @transform_1, window_bounds = array<i64: 32, 256>}, {pipeline_mode = #tpu.pipeline_mode<synchronous>, transform_indices = @transform_2, window_bounds = array<i64: 1, 256>}, {pipeline_mode = #tpu.pipeline_mode<synchronous>, transform_indices = @transform_3, window_bounds = array<i64: 256, 128>}, {pipeline_mode = #tpu.pipeline_mode<synchronous>, transform_indices = @transform_4, window_bounds = array<i64: 1, 128>}, {pipeline_mode = #tpu.pipeline_mode<synchronous>, transform_indices = @transform_5, window_bounds = array<i64: 128, 128>}, {pipeline_mode = #tpu.pipeline_mode<synchronous>, transform_indices = @transform_6, window_bounds = array<i64: 1, 128>}, {pipeline_mode = #tpu.pipeline_mode<synchronous>, transform_indices = @transform_7, window_bounds = array<i64: 128, 4>}, {pipeline_mode = #tpu.pipeline_mode<synchronous>, transform_indices = @transform_8, window_bounds = array<i64: 1, 4>}, {transform_indices = @transform_9, window_bounds = array<i64: 8, 4>}]} {
    %c0 = arith.constant 0 : index
    %c0_0 = arith.constant 0 : index
    %0 = vector.load %arg1[%c0, %c0_0] : memref<8x32xf32, #tpu.memory_space<vmem>>, vector<8x32xf32>
    %c0_1 = arith.constant 0 : index
    %c0_2 = arith.constant 0 : index
    %1 = vector.load %arg2[%c0_1, %c0_2] : memref<32x256xf32, #tpu.memory_space<vmem>>, vector<32x256xf32>
    %cst = arith.constant dense<0.000000e+00> : vector<8x256xf32>
    %2 = tpu.matmul %0, %1, %cst {dimension_numbers = #tpu.dot_dimension_numbers<[1], [0], [0], [1], [0, 0, 1, 1], [], []>} : vector<8x32xf32>, vector<32x256xf32>, vector<8x256xf32> -> vector<8x256xf32>
    %c0_3 = arith.constant 0 : index
    %c0_4 = arith.constant 0 : index
    %3 = vector.load %arg3[%c0_3, %c0_4] : memref<1x256xf32, #tpu.memory_space<vmem>>, vector<1x256xf32>
    %4 = vector.broadcast %3 : vector<1x256xf32> to vector<8x256xf32>
    %5 = arith.addf %2, %4 : vector<8x256xf32>
    %cst_5 = arith.constant 0.000000e+00 : f32
    %6 = vector.broadcast %cst_5 : f32 to vector<8x256xf32>
    %7 = arith.maximumf %5, %6 : vector<8x256xf32>
    %c0_6 = arith.constant 0 : index
    %c0_7 = arith.constant 0 : index
    %8 = vector.load %arg4[%c0_6, %c0_7] : memref<256x128xf32, #tpu.memory_space<vmem>>, vector<256x128xf32>
    %cst_8 = arith.constant dense<0.000000e+00> : vector<8x128xf32>
    %9 = tpu.matmul %7, %8, %cst_8 {dimension_numbers = #tpu.dot_dimension_numbers<[1], [0], [0], [1], [0, 0, 1, 1], [], []>} : vector<8x256xf32>, vector<256x128xf32>, vector<8x128xf32> -> vector<8x128xf32>
    %c0_9 = arith.constant 0 : index
    %c0_10 = arith.constant 0 : index
    %10 = vector.load %arg5[%c0_9, %c0_10] : memref<1x128xf32, #tpu.memory_space<vmem>>, vector<1x128xf32>
    %11 = vector.broadcast %10 : vector<1x128xf32> to vector<8x128xf32>
    %12 = arith.addf %9, %11 : vector<8x128xf32>
    %cst_11 = arith.constant 0.000000e+00 : f32
    %13 = vector.broadcast %cst_11 : f32 to vector<8x128xf32>
    %14 = arith.maximumf %12, %13 : vector<8x128xf32>
    %c0_12 = arith.constant 0 : index
    %c0_13 = arith.constant 0 : index
    %15 = vector.load %arg6[%c0_12, %c0_13] : memref<128x128xf32, #tpu.memory_space<vmem>>, vector<128x128xf32>
    %cst_14 = arith.constant dense<0.000000e+00> : vector<8x128xf32>
    %16 = tpu.matmul %14, %15, %cst_14 {dimension_numbers = #tpu.dot_dimension_numbers<[1], [0], [0], [1], [0, 0, 1, 1], [], []>} : vector<8x128xf32>, vector<128x128xf32>, vector<8x128xf32> -> vector<8x128xf32>
    %c0_15 = arith.constant 0 : index
    %c0_16 = arith.constant 0 : index
    %17 = vector.load %arg7[%c0_15, %c0_16] : memref<1x128xf32, #tpu.memory_space<vmem>>, vector<1x128xf32>
    %18 = vector.broadcast %17 : vector<1x128xf32> to vector<8x128xf32>
    %19 = arith.addf %16, %18 : vector<8x128xf32>
    %cst_17 = arith.constant 0.000000e+00 : f32
    %20 = vector.broadcast %cst_17 : f32 to vector<8x128xf32>
    %21 = arith.maximumf %19, %20 : vector<8x128xf32>
    %c0_18 = arith.constant 0 : index
    %c0_19 = arith.constant 0 : index
    %22 = vector.load %arg8[%c0_18, %c0_19] : memref<128x4xf32, #tpu.memory_space<vmem>>, vector<128x4xf32>
    %cst_20 = arith.constant dense<0.000000e+00> : vector<8x4xf32>
    %23 = tpu.matmul %21, %22, %cst_20 {dimension_numbers = #tpu.dot_dimension_numbers<[1], [0], [0], [1], [0, 0, 1, 1], [], []>} : vector<8x128xf32>, vector<128x4xf32>, vector<8x4xf32> -> vector<8x4xf32>
    %c0_21 = arith.constant 0 : index
    %c0_22 = arith.constant 0 : index
    %24 = vector.load %arg9[%c0_21, %c0_22] : memref<1x4xf32, #tpu.memory_space<vmem>>, vector<1x4xf32>
    %25 = vector.broadcast %24 : vector<1x4xf32> to vector<8x4xf32>
    %26 = arith.addf %23, %25 : vector<8x4xf32>
    %c0_23 = arith.constant 0 : index
    %c0_24 = arith.constant 0 : index
    %27 = vector.load %arg10[%c0_23, %c0_24] : memref<8x4xf32, #tpu.memory_space<vmem>>, vector<8x4xf32>
    tpu.vector_store %arg10[%c0_23, %c0_24], %26 {strides = array<i32>} : memref<8x4xf32, #tpu.memory_space<vmem>>, vector<8x4xf32>,
    return
  }
  func.func @transform_0(%arg0: i32) -> (i32, i32) {
    %c0_i32 = arith.constant 0 : i32
    %c0_i32_0 = arith.constant 0 : i32
    return %arg0, %c0_i32 : i32, i32
  }
  func.func @transform_1(%arg0: i32) -> (i32, i32) {
    %c0_i32 = arith.constant 0 : i32
    %c0_i32_0 = arith.constant 0 : i32
    %c0_i32_1 = arith.constant 0 : i32
    return %c0_i32, %c0_i32_0 : i32, i32
  }
  func.func @transform_2(%arg0: i32) -> (i32, i32) {
    %c0_i32 = arith.constant 0 : i32
    %c0_i32_0 = arith.constant 0 : i32
    %c0_i32_1 = arith.constant 0 : i32
    return %c0_i32, %c0_i32_0 : i32, i32
  }
  func.func @transform_3(%arg0: i32) -> (i32, i32) {
    %c0_i32 = arith.constant 0 : i32
    %c0_i32_0 = arith.constant 0 : i32
    %c0_i32_1 = arith.constant 0 : i32
    return %c0_i32, %c0_i32_0 : i32, i32
  }
  func.func @transform_4(%arg0: i32) -> (i32, i32) {
    %c0_i32 = arith.constant 0 : i32
    %c0_i32_0 = arith.constant 0 : i32
    %c0_i32_1 = arith.constant 0 : i32
    return %c0_i32, %c0_i32_0 : i32, i32
  }
  func.func @transform_5(%arg0: i32) -> (i32, i32) {
    %c0_i32 = arith.constant 0 : i32
    %c0_i32_0 = arith.constant 0 : i32
    %c0_i32_1 = arith.constant 0 : i32
    return %c0_i32, %c0_i32_0 : i32, i32
  }
  func.func @transform_6(%arg0: i32) -> (i32, i32) {
    %c0_i32 = arith.constant 0 : i32
    %c0_i32_0 = arith.constant 0 : i32
    %c0_i32_1 = arith.constant 0 : i32
    return %c0_i32, %c0_i32_0 : i32, i32
  }
  func.func @transform_7(%arg0: i32) -> (i32, i32) {
    %c0_i32 = arith.constant 0 : i32
    %c0_i32_0 = arith.constant 0 : i32
    %c0_i32_1 = arith.constant 0 : i32
    return %c0_i32, %c0_i32_0 : i32, i32
  }
  func.func @transform_8(%arg0: i32) -> (i32, i32) {
    %c0_i32 = arith.constant 0 : i32
    %c0_i32_0 = arith.constant 0 : i32
    %c0_i32_1 = arith.constant 0 : i32
    return %c0_i32, %c0_i32_0 : i32, i32
  }
  func.func @transform_9(%arg0: i32) -> (i32, i32) {
    %c0_i32 = arith.constant 0 : i32
    %c0_i32_0 = arith.constant 0 : i32
    return %arg0, %c0_i32 : i32, i32
  }
}

</mosaic_0001>

<bundles_post_ra>
// kernel: tpu_custom_call.1
= control target key start
LH: loop header
LB: loop body
LE: loop exit
PB: predicated region body
PF: predicated region fallthrough
CT: control target
= control target key end

     0   :  { %14 = vsyncpa [#allocation3], 0  ;;  %s967_s0 = inlined_call_operand.vmem [shape: f32[8,32], index: 0, kind: input, shape index: {}]   ;;  %s968_s1 = inlined_call_operand.hbm [shape: f32[32,256], index: 1, kind: input, shape index: {}]   ;;  %s969_s2 = inlined_call_operand.vmem [shape: f32[1,256], index: 2, kind: input, shape index: {}]   ;;  %s970_s3 = inlined_call_operand.hbm [shape: f32[256,128], index: 3, kind: input, shape index: {}]   ;;  %s971_s4 = inlined_call_operand.vmem [shape: f32[1,128], index: 4, kind: input, shape index: {}]   ;;  %s972_s5 = inlined_call_operand.vmem [shape: f32[128,128], index: 5, kind: input, shape index: {}]   ;;  %s973_s6 = inlined_call_operand.vmem [shape: f32[1,128], index: 6, kind: input, shape index: {}]   ;;  %s974_s7 = inlined_call_operand.vmem [shape: f32[128,4], index: 7, kind: input, shape index: {}]   ;;  %s975_s8 = inlined_call_operand.vmem [shape: f32[1,4], index: 8, kind: input, shape index: {}]   ;;  %s976_s9 = inlined_call_operand.vmem [shape: f32[8,4], index: 9, kind: output, shape index: {}]  }
   0x1   :  { %15 = vsyncpa [#allocation5], 0  ;;  %s751_s30 = smov [#allocation2]   ;;  %s703_s13 = scalar_lea.hbm %s968_s1, 1024 }
   0x2   :  { %s23_s10 = sshll.u32 %s751_s30, 4  ;;  %p704_p0 = scmp.ne.s32.totalorder %s968_s1, %s703_s13  ;;  %s24_s10 = int_to_ptr.vmem [resolvable:$true] %s23_s10 }
   0x3   :  { %p707_p1 = scmp.lt.u32.totalorder %s703_s13, %s968_s1 }
   0x5   :  { %p709_p2 = pnand %p707_p1, %p704_p0 }
   0x7   :  { %712 = shalt.err (!%p709_p2)
}
   0x8   :  { %s713_s18 = scalar_lea.vmem %s24_s10, 1024  ;;  %p718_p4 = scmp.lt.s32.totalorder %s24_s10, %s24_s10 }
   0x9   :  { %p714_p3 = scmp.ne.s32.totalorder %s24_s10, %s713_s18  ;;  %p719_p5 = scmp.lt.s32.totalorder %s713_s18, %s713_s18 }
   0xb   :  { %p720_p6 = por %p719_p5, %p718_p4 }
   0xd   :  { %p721_p7 = pnand %p720_p6, %p714_p3 }
   0xf   :  { %724 = shalt.err (!%p721_p7)
}
  0x10   :  { %s752_s19 = smov 256   ;;  %s753_s20 = smov 16  }
  0x11   :  { %29 = dma.hbm_to_vmem [thread:$0]  %s968_s1, 1024, %s24_s10, [#allocation3], %s752_s19, %s752_s19, %s753_s20  }
  0x12   :  { %s754_s23 = smov [#allocation4]   ;;  %s725_s27 = scalar_lea.hbm %s970_s3, 4096 }
  0x13   :  { %s37_s24 = sshll.u32 %s754_s23, 4  ;;  %p726_p8 = scmp.ne.s32.totalorder %s970_s3, %s725_s27  ;;  %s38_s24 = int_to_ptr.vmem [resolvable:$true] %s37_s24 }
  0x14   :  { %p729_p9 = scmp.lt.u32.totalorder %s725_s27, %s970_s3 }
  0x16   :  { %p731_p10 = pnand %p729_p9, %p726_p8 }
  0x18   :  { %734 = shalt.err (!%p731_p10)
}
  0x19   :  { %s735_s12 = scalar_lea.vmem %s38_s24, 4096  ;;  %p740_p12 = scmp.lt.s32.totalorder %s38_s24, %s38_s24 }
  0x1a   :  { %p736_p11 = scmp.ne.s32.totalorder %s38_s24, %s735_s12  ;;  %p741_p13 = scmp.lt.s32.totalorder %s735_s12, %s735_s12 }
  0x1c   :  { %p742_p0 = por %p741_p13, %p740_p12 }
  0x1e   :  { %p743_p1 = pnand %p742_p0, %p736_p11 }
  0x20   :  { %746 = shalt.err (!%p743_p1)
}
  0x21   :  { %s755_s1 = smov 128   ;;  %s756_s10 = smov 8  }
  0x22   :  { %43 = dma.hbm_to_vmem [thread:$0]  %s970_s3, 4096, %s38_s24, [#allocation5], %s755_s1, %s755_s1, %s756_s10  }
  0x23   :  { %747 = dma.done.wait [#allocation3], 1024  }
  0x24   :  { %748 = vsyncadd [#allocation3], 4294966272 }
  0x25   :  { %749 = dma.done.wait [#allocation5], 4096  }
  0x26   :  { %750 = vsyncadd [#allocation5], 4294963200  ;;  %v757_v0 = vmov 0.0   ;;  %v62_v1 = vld [vmem:[#allocation2 + $0x8] sm:$0xff]  ;;  %v64_v2 = vld [vmem:[#allocation2 + $0x18] sm:$0xff]  ;;  %vm81_vm0 = vcmask 261120  }
  0x27   :  { %149 = vmatprep.mubr.f32.mxu0 %v757_v0  ;;  %v61_v3 = vld [vmem:[#allocation2] sm:$0xff]  ;;  %v606_v4 = vpack.c.bf16 %v64_v2, %v62_v1  ;;  %v63_v5 = vld [vmem:[#allocation2 + $0x10] sm:$0xff]  ;;  %v66_v6 = vld [vmem:[#allocation2 + $0x28] sm:$0xff]  ;;  %v758_v2 = vmov 0.0|0.0   ;;  %vm759_vm1 = vmmov 0   ;;  %vm455_vm2 = vcmask 31744  }
  0x28   :  { %v68_v7 = vld [vmem:[#allocation2 + $0x38] sm:$0xff]  ;;  %v608_v8 = vpack.c.bf16 %v63_v5, %v61_v3  ;;  %v65_v10 = vld [vmem:[#allocation2 + $0x20] sm:$0xff]  ;;  %v67_v11 = vld [vmem:[#allocation2 + $0x30] sm:$0xff] }
  0x29   :  { %v610_v9 = vpack.c.bf16 %v68_v7, %v66_v6  ;;  %607 = vmatprep.subr.bf16.mxu0 %v606_v4  ;;  %v174_v12 = vld [vmem:[#allocation4 + $0x80] sm:$0xff]  ;;  %v175_v13 = vld [vmem:[#allocation4 + $0x88] sm:$0xff]  ;;  %v612_v15 = vpack.c.bf16 %v67_v11, %v65_v10  ;;  %v176_v18 = vld [vmem:[#allocation4 + $0x90] sm:$0xff] }
  0x2a   :  { %v158_v14 = vld [vmem:[#allocation4] sm:$0xff]  ;;  %609 = vmatpush1.bf16.msra.mxu0 %v608_v8  ;;  %v614_v16 = vpack.c.bf16 %v175_v13, %v174_v12  ;;  %v159_v17 = vld [vmem:[#allocation4 + $0x8] sm:$0xff]  ;;  %v177_v19 = vld [vmem:[#allocation4 + $0x98] sm:$0xff] }
  0x2b   :  { %611 = vmatprep.subr.bf16.mxu0 %v610_v9  ;;  %v616_v20 = vpack.c.bf16 %v159_v17, %v158_v14  ;;  %v618_v21 = vpack.c.bf16 %v177_v19, %v176_v18  ;;  %v160_v22 = vld [vmem:[#allocation4 + $0x10] sm:$0xff]  ;;  %v161_v23 = vld [vmem:[#allocation4 + $0x18] sm:$0xff]  ;;  %v178_v24 = vld [vmem:[#allocation4 + $0xa0] sm:$0xff]  ;;  %v71_v18 = vlaneseq }
  0x2c   :  { %615 = vmatprep.subr.bf16.mxu1 %v614_v16  ;;  %v179_v25 = vld [vmem:[#allocation4 + $0xa8] sm:$0xff]  ;;  %v620_v26 = vpack.c.bf16 %v161_v23, %v160_v22  ;;  %v60_v27 = vld [vmem:[%s967_s0] sm:$0xff]  ;;  %v180_v31 = vld [vmem:[#allocation4 + $0xb0] sm:$0xff] }
  0x2d   :  { %617 = vmatpush3.bf16.msra.mxu1 %v616_v20  ;;  %v622_v28 = vpack.c.bf16 %v179_v25, %v178_v24  ;;  %v162_v29 = vld [vmem:[#allocation4 + $0x20] sm:$0xff]  ;;  %v163_v30 = vld [vmem:[#allocation4 + $0x28] sm:$0xff]  ;;  %v181_v32 = vld [vmem:[#allocation4 + $0xb8] sm:$0xff]  ;;  %v72_v19 = vshrl.u32 %v71_v18, 7 }
  0x2e   :  { %613 = vmatpush1.bf16.msra.mxu0 %v612_v15  ;;  %619 = vmatprep.subr.bf16.mxu1 %v618_v21  ;;  %v624_v33 = vpack.c.bf16 %v163_v30, %v162_v29  ;;  %v626_v34 = vpack.c.bf16 %v181_v32, %v180_v31  ;;  %v164_v35 = vld [vmem:[#allocation4 + $0x30] sm:$0xff]  ;;  %v165_v36 = vld [vmem:[#allocation4 + $0x38] sm:$0xff]  ;;  %v182_v37 = vld [vmem:[#allocation4 + $0xc0] sm:$0xff] }
  0x2f   :  { %v183_v38 = vld [vmem:[#allocation4 + $0xc8] sm:$0xff]  ;;  %v628_v39 = vpack.c.bf16 %v165_v36, %v164_v35  ;;  %v166_v41 = vld [vmem:[#allocation4 + $0x40] sm:$0xff]  ;;  %v184_v43 = vld [vmem:[#allocation4 + $0xd0] sm:$0xff]  ;;  %646 = vmatprep.subr.bf16.mxu0 %v758_v2  ;;  %v73_v20 = vsub.s32 0, %v72_v19  ;;  %v77_v22 = vsub.s32 1, %v72_v19 }
  0x30   :  { %v630_v40 = vpack.c.bf16 %v183_v38, %v182_v37  ;;  %v167_v42 = vld [vmem:[#allocation4 + $0x48] sm:$0xff]  ;;  %v185_v44 = vld [vmem:[#allocation4 + $0xd8] sm:$0xff]  ;;  %v168_v47 = vld [vmem:[#allocation4 + $0x50] sm:$0xff] }
  0x31   :  { %463 = vmatmul.mubr.msk.f32.vlgmr.msra.gmra.mrb[0].mxu0 %vm81_vm0, %v60_v27  ;;  %621 = vmatpush3.bf16.msra.mxu1 %v620_v26  ;;  %v632_v45 = vpack.c.bf16 %v167_v42, %v166_v41  ;;  %v634_v46 = vpack.c.bf16 %v185_v44, %v184_v43  ;;  %v169_v48 = vld [vmem:[#allocation4 + $0x58] sm:$0xff]  ;;  %v186_v49 = vld [vmem:[#allocation4 + $0xe0] sm:$0xff]  ;;  %v187_v50 = vld [vmem:[#allocation4 + $0xe8] sm:$0xff] }
  0x32   :  { %623 = vmatprep.subr.bf16.mxu1 %v622_v28  ;;  %v636_v51 = vpack.c.bf16 %v169_v48, %v168_v47  ;;  %v638_v52 = vpack.c.bf16 %v187_v50, %v186_v49  ;;  %v170_v53 = vld [vmem:[#allocation4 + $0x60] sm:$0xff]  ;;  %v171_v54 = vld [vmem:[#allocation4 + $0x68] sm:$0xff]  ;;  %v188_v56 = vld [vmem:[#allocation4 + $0xf0] sm:$0xff]  ;;  %568 = vmatprep.mubr.msk.f32.mxu0 %vm759_vm1, %v757_v0 }
  0x33   :  { %v640_v55 = vpack.c.bf16 %v171_v54, %v170_v53  ;;  %v189_v57 = vld [vmem:[#allocation4 + $0xf8] sm:$0xff]  ;;  %v172_v59 = vld [vmem:[#allocation4 + $0x70] sm:$0xff]  ;;  %v268_v62 = vld [vmem:[%s972_s5] sm:$0xff] }
  0x34   :  { %v642_v58 = vpack.c.bf16 %v189_v57, %v188_v56  ;;  %v173_v60 = vld [vmem:[#allocation4 + $0x78] sm:$0xff]  ;;  %v269_v63 = vld [vmem:[%s972_s5 + $0x8] sm:$0xff]  ;;  %v270_v1 = vld [vmem:[%s972_s5 + $0x10] sm:$0xff] }
  0x35   :  { %625 = vmatpush3.bf16.msra.mxu1 %v624_v33  ;;  %v644_v61 = vpack.c.bf16 %v173_v60, %v172_v59  ;;  %v647_v3 = vpack.c.bf16 %v269_v63, %v268_v62  ;;  %v271_v4 = vld [vmem:[%s972_s5 + $0x18] sm:$0xff]  ;;  %v272_v6 = vld [vmem:[%s972_s5 + $0x20] sm:$0xff]  ;;  %v273_v7 = vld [vmem:[%s972_s5 + $0x28] sm:$0xff] }
  0x36   :  { %627 = vmatprep.subr.bf16.mxu1 %v626_v34  ;;  %v650_v5 = vpack.c.bf16 %v271_v4, %v270_v1  ;;  %v653_v8 = vpack.c.bf16 %v273_v7, %v272_v6  ;;  %v274_v9 = vld [vmem:[%s972_s5 + $0x30] sm:$0xff]  ;;  %v275_v10 = vld [vmem:[%s972_s5 + $0x38] sm:$0xff]  ;;  %v276_v12 = vld [vmem:[%s972_s5 + $0x40] sm:$0xff] }
  0x37   :  { %648 = vmatpush3.bf16.msra.mxu0 %v647_v3  ;;  %v656_v11 = vpack.c.bf16 %v275_v10, %v274_v9  ;;  %v277_v13 = vld [vmem:[%s972_s5 + $0x48] sm:$0xff]  ;;  %v278_v15 = vld [vmem:[%s972_s5 + $0x50] sm:$0xff]  ;;  %v279_v16 = vld [vmem:[%s972_s5 + $0x58] sm:$0xff] }
  0x38   :  { %649 = vmatprep.subr.bf16.mxu0 %v758_v2  ;;  %v659_v14 = vpack.c.bf16 %v277_v13, %v276_v12  ;;  %v662_v17 = vpack.c.bf16 %v279_v16, %v278_v15  ;;  %v69_v21 = vld [vmem:[%s969_s2] sm:$0x3]  ;;  %v281_v32 = vld [vmem:[%s972_s5 + $0x68] sm:$0xff]  ;;  %v282_v34 = vld [vmem:[%s972_s5 + $0x70] sm:$0xff] }
  0x39   :  { %629 = vmatpush3.bf16.msra.mxu1 %v628_v39  ;;  %v74_v23 = vrot.slane %v69_v21, %v73_v20  ;;  %v78_v24 = vrot.slane %v69_v21, %v77_v22  ;;  %v280_v31 = vld [vmem:[%s972_s5 + $0x60] sm:$0xff]  ;;  %v283_v35 = vld [vmem:[%s972_s5 + $0x78] sm:$0xff]  ;;  %v363_v38 = vld [vmem:[%s974_s7 + $0x8] sm:$0xff] }
  0x3a   :  { %631 = vmatprep.subr.bf16.mxu1 %v630_v40  ;;  %v665_v33 = vpack.c.bf16 %v281_v32, %v280_v31  ;;  %v668_v36 = vpack.c.bf16 %v283_v35, %v282_v34  ;;  %v362_v37 = vld [vmem:[%s974_s7] sm:$0xff]  ;;  %v364_v39 = vld [vmem:[%s974_s7 + $0x10] sm:$0xff]  ;;  %v365_v41 = vld [vmem:[%s974_s7 + $0x18] sm:$0xff] }
  0x3b   :  { %651 = vmatpush3.bf16.msra.mxu0 %v650_v5  ;;  %v671_v40 = vpack.c.bf16 %v363_v38, %v362_v37  ;;  %v674_v42 = vpack.c.bf16 %v365_v41, %v364_v39  ;;  %v367_v43 = vld [vmem:[%s974_s7 + $0x28] sm:$0xff]  ;;  %v370_v48 = vld [vmem:[%s974_s7 + $0x40] sm:$0xff]  ;;  %v376_v63 = vld [vmem:[%s974_s7 + $0x70] sm:$0xff] }
  0x3c   :  { %652 = vmatprep.subr.bf16.mxu0 %v758_v2  ;;  %v371_v49 = vld [vmem:[%s974_s7 + $0x48] sm:$0xff]  ;;  %v374_v54 = vld [vmem:[%s974_s7 + $0x60] sm:$0xff]  ;;  %v377_v1 = vld [vmem:[%s974_s7 + $0x78] sm:$0xff] }
  0x3d   :  { %633 = vmatpush3.bf16.msra.mxu1 %v632_v45  ;;  %v368_v45 = vld [vmem:[%s974_s7 + $0x30] sm:$0xff]  ;;  %v683_v50 = vpack.c.bf16 %v371_v49, %v370_v48  ;;  %v692_v3 = vpack.c.bf16 %v377_v1, %v376_v63 }
  0x3e   :  { %635 = vmatprep.subr.bf16.mxu1 %v634_v46  ;;  %v369_v46 = vld [vmem:[%s974_s7 + $0x38] sm:$0xff] }
  0x3f   :  { %654 = vmatpush3.bf16.msra.mxu0 %v653_v8  ;;  %v680_v47 = vpack.c.bf16 %v369_v46, %v368_v45  ;;  %v466_v8 = vld [vmem:[%s975_s8] ss:$0 sm:$0xff] }
  0x40   :  { %655 = vmatprep.subr.bf16.mxu0 %v758_v2 }
  0x41   :  { %637 = vmatpush3.bf16.msra.mxu1 %v636_v51  ;;  %v372_v51 = vld [vmem:[%s974_s7 + $0x50] sm:$0xff] }
  0x42   :  { %639 = vmatprep.subr.bf16.mxu1 %v638_v52  ;;  %v373_v52 = vld [vmem:[%s974_s7 + $0x58] sm:$0xff] }
  0x43   :  { %657 = vmatpush3.bf16.msra.mxu0 %v656_v11  ;;  %v686_v53 = vpack.c.bf16 %v373_v52, %v372_v51 }
  0x44   :  { %658 = vmatprep.subr.bf16.mxu0 %v758_v2 }
  0x45   :  { %641 = vmatpush3.bf16.msra.mxu1 %v640_v55  ;;  %v375_v55 = vld [vmem:[%s974_s7 + $0x68] sm:$0xff] }
  0x46   :  { %643 = vmatprep.subr.bf16.mxu1 %v642_v58  ;;  %v689_v56 = vpack.c.bf16 %v375_v55, %v374_v54  ;;  %v464_v58 = vld [vmem:[%s971_s4] ss:$0 sm:$0xff] }
  0x47   :  { %660 = vmatpush3.bf16.msra.mxu0 %v659_v14 }
  0x48   :  { %661 = vmatprep.subr.bf16.mxu0 %v758_v2 }
  0x49   :  { %645 = vmatpush3.bf16.msra.mxu1 %v644_v61 }
  0x4a   :  { %670 = vmatprep.subr.bf16.mxu1 %v758_v2 }
  0x4b   :  { %663 = vmatpush3.bf16.msra.mxu0 %v662_v17 }
  0x4c   :  { %664 = vmatprep.subr.bf16.mxu0 %v758_v2 }
  0x4f   :  { %666 = vmatpush3.bf16.msra.mxu0 %v665_v33 }
  0x50   :  { %667 = vmatprep.subr.bf16.mxu0 %v758_v2 }
  0x53   :  { %669 = vmatpush3.bf16.msra.mxu0 %v668_v36 }
 0x104   :  { %v151_v25 = vpop.f32.mrb[0].mxu0 }
 0x105   :  { %v152_v26 = vadd.f32 %v151_v25, %v74_v23  ;;  %v153_v27 = vpop.f32.mrb[1].mxu0 }
 0x106   :  { %v154_v28 = vadd.f32 %v153_v27, %v78_v24 }
 0x107   :  { %v156_v30 = vmax.f32 %v152_v26, 0.0 }
 0x108   :  { %v157_v29 = vmax.f32 %v154_v28, 0.0 }
 0x10a   :  { %261 = vmatprep.mubr.f32.mxu1 %v157_v29 }
 0x10b   :  { %262 = vmatmul.mubr.f32.vlgmr.msra.gmra.mrb[0].mxu1 %v156_v30 }
 0x10c   :  { %603 = vmatprep.mubr.msk.f32.mxu1 %vm759_vm1, %v757_v0  ;;  %672 = vmatpush3.bf16.msra.mxu1 %v671_v40  ;;  %v366_v0 = vld [vmem:[%s974_s7 + $0x20] sm:$0xff] }
 0x10d   :  { %673 = vmatprep.subr.bf16.mxu1 %v758_v2  ;;  %v677_v44 = vpack.c.bf16 %v367_v43, %v366_v0 }
 0x110   :  { %675 = vmatpush3.bf16.msra.mxu1 %v674_v42 }
 0x111   :  { %676 = vmatprep.subr.bf16.mxu1 %v758_v2 }
 0x114   :  { %678 = vmatpush3.bf16.msra.mxu1 %v677_v44 }
 0x115   :  { %679 = vmatprep.subr.bf16.mxu1 %v758_v2 }
 0x118   :  { %681 = vmatpush3.bf16.msra.mxu1 %v680_v47 }
 0x119   :  { %682 = vmatprep.subr.bf16.mxu1 %v758_v2 }
 0x11c   :  { %684 = vmatpush3.bf16.msra.mxu1 %v683_v50 }
 0x11d   :  { %685 = vmatprep.subr.bf16.mxu1 %v758_v2 }
 0x120   :  { %687 = vmatpush3.bf16.msra.mxu1 %v686_v53 }
 0x121   :  { %688 = vmatprep.subr.bf16.mxu1 %v758_v2 }
 0x124   :  { %690 = vmatpush3.bf16.msra.mxu1 %v689_v56 }
 0x125   :  { %691 = vmatprep.subr.bf16.mxu1 %v758_v2  ;;  %v465_v2 = vld [vmem:[%s973_s6] ss:$0 sm:$0xff] }
 0x128   :  { %693 = vmatpush3.bf16.msra.mxu1 %v692_v3 }
 0x1de   :  { %v499_v57 = vpop.f32.mrb[0].mxu1 }
 0x1df   :  { %v500_v59 = vpop.f32.mrb[1].mxu1 }
 0x1e0   :  { %v501_v60 = vadd.f32 %v500_v59, %v499_v57 }
 0x1e2   :  { %v264_v61 = vadd.f32 %v501_v60, %v464_v58 }
 0x1e4   :  { %v267_v62 = vmax.f32 %v264_v61, 0.0 }
 0x1e6   :  { %569 = vmatmul.mubr.f32.vlgmr.msra.gmra.mrb[2].mxu0 %v267_v62 }
 0x2b9   :  { %v357_v4 = vpop.f32.mrb[2].mxu0 }
 0x2ba   :  { %v358_v5 = vadd.f32 %v465_v2, %v357_v4  ;;  %v570_v6 = vpop.f32.mrb[3].mxu0 }
 0x2bc   :  { %v361_v7 = vmax.f32 %v358_v5, 0.0 }
 0x2be   :  { %604 = vmatmul.mubr.f32.vlgmr.msra.gmra.mrb[2].mxu1 %v361_v7 }
 0x391   :  { %v451_v9 = vpop.f32.mrb[2].mxu1 }
 0x392   :  { %v452_v10 = vadd.f32 %v466_v8, %v451_v9  ;;  %v605_v11 = vpop.f32.mrb[3].mxu1 }
 0x394   :  { %456 = vst.msk [vmem:[%s976_s9] sm:$0xff] %vm455_vm2, %v452_v10 }
 0x395   :  { %461 = vsyncpa [#allocation3], 1 }
 0x396   :  { %462 = vsyncpa [#allocation5], 1 }

</bundles_post_ra>
